<compile_context>
chip_gen: v5e
topology: v5e:2x2
jax: 0.10.0
libtpu: 0.0.40
codegen_flags: <defaults>
</compile_context>

<pallas_src>
import jax
import jax.numpy as jnp
from jax.experimental import pallas as pl
from jax.experimental.pallas import tpu as pltpu
import numpy as np

# ---- sizes implied by the module defaults ----
B = 4                       # batch
IN_FEATURE = 64 * 3 * 15    # 2880 (module default in_feature)
HIDDEN = 100                # intermediate_nodes (module default)
NUM_CLASS = 5               # num_class


def classifier_kernel(x_ref, w1_ref, b1_ref, w2_ref, b2_ref, o_ref):
    """Single invocation, all operands fully resident in VMEM.

    x_ref  : (B, IN_FEATURE)
    w1_ref : (IN_FEATURE, HIDDEN)   fc1 weight, already transposed to (in, out)
    b1_ref : (1, HIDDEN)
    w2_ref : (HIDDEN, NUM_CLASS)    fc2 weight, already transposed to (in, out)
    b2_ref : (1, NUM_CLASS)
    o_ref  : (B, NUM_CLASS)         softmax probabilities
    """
    # fc1 + bias + relu  (dropout == identity, inference mode)
    h = jnp.dot(x_ref[...], w1_ref[...], preferred_element_type=jnp.float32)
    h = jnp.maximum(h + b1_ref[...], 0.0)

    # fc2 + bias
    logits = jnp.dot(h, w2_ref[...], preferred_element_type=jnp.float32)
    logits = logits + b2_ref[...]

    # numerically-stable softmax over the class axis (dim=1)
    m = jnp.max(logits, axis=-1, keepdims=True)
    e = jnp.exp(logits - m)
    o_ref[...] = e / jnp.sum(e, axis=-1, keepdims=True)


def class_classifier_forward(x, w1, b1, w2, b2):
    """x: (B, IN_FEATURE); w1: (HIDDEN, IN_FEATURE) torch layout; w2: (NUM_CLASS, HIDDEN).

    Returns softmax probabilities of shape (B, NUM_CLASS).
    """
    x = x.astype(jnp.float32)
    w1t = jnp.transpose(w1).astype(jnp.float32)       # (IN_FEATURE, HIDDEN)
    w2t = jnp.transpose(w2).astype(jnp.float32)       # (HIDDEN, NUM_CLASS)
    b1r = b1.reshape(1, -1).astype(jnp.float32)       # (1, HIDDEN)
    b2r = b2.reshape(1, -1).astype(jnp.float32)       # (1, NUM_CLASS)

    vmem = pl.BlockSpec(memory_space=pltpu.MemorySpace.VMEM)  # whole array in VMEM

    return pl.pallas_call(
        classifier_kernel,
        out_shape=jax.ShapeDtypeStruct((x.shape[0], NUM_CLASS), jnp.float32),
        # No grid: one invocation covers the whole batch; every operand is a
        # full-array VMEM block, so there is no per-step pipeline overhead.
        in_specs=[vmem, vmem, vmem, vmem, vmem],
        out_specs=vmem,
    )(x, w1t, b1r, w2t, b2r)


def class_classifier_reference(x, w1, b1, w2, b2):
    """Pure-JAX reference mirroring the PyTorch forward (dropout as identity)."""
    h = jnp.dot(x, w1.T, preferred_element_type=jnp.float32) + b1[None, :]
    h = jnp.maximum(h, 0.0)
    logits = jnp.dot(h, w2.T, preferred_element_type=jnp.float32) + b2[None, :]
    return jax.nn.softmax(logits, axis=1)


if __name__ == "__main__":
    key = jax.random.PRNGKey(0)
    kx, k1, k2, k3, k4 = jax.random.split(key, 5)

    x = jax.random.normal(kx, (B, IN_FEATURE), jnp.float32)
    w1 = jax.random.normal(k1, (HIDDEN, IN_FEATURE), jnp.float32) / np.sqrt(IN_FEATURE)
    b1 = 0.1 * jax.random.normal(k2, (HIDDEN,), jnp.float32)
    w2 = jax.random.normal(k3, (NUM_CLASS, HIDDEN), jnp.float32) / np.sqrt(HIDDEN)
    b2 = 0.1 * jax.random.normal(k4, (NUM_CLASS,), jnp.float32)

    out = jax.block_until_ready(class_classifier_forward(x, w1, b1, w2, b2))
    ref = jax.block_until_ready(class_classifier_reference(x, w1, b1, w2, b2))

    # Tolerance accounts for DEFAULT-precision MXU passes (bf16-based) vs. the
    # XLA reference on a 2880-wide contraction; errors on softmax probabilities
    # stay well inside this band.
    np.testing.assert_allclose(np.asarray(out), np.asarray(ref), rtol=1e-2, atol=2e-3)
    assert np.allclose(np.asarray(out).sum(axis=1), 1.0, atol=1e-5)
    print("KERNEL_OK")
</pallas_src>

<mosaic_0001>
module attributes {stable_mosaic.version = 11 : i64} {
  func.func @classifier_kernel(%arg0: memref<4x2880xf32, #tpu.memory_space<vmem>>, %arg1: memref<2880x100xf32, #tpu.memory_space<vmem>>, %arg2: memref<1x100xf32, #tpu.memory_space<vmem>>, %arg3: memref<100x5xf32, #tpu.memory_space<vmem>>, %arg4: memref<1x5xf32, #tpu.memory_space<vmem>>, %arg5: memref<4x5xf32, #tpu.memory_space<vmem>>) attributes {dimension_semantics = [], scalar_prefetch = 0 : i64, scratch_operands = 0 : i64, tpu.core_type = #tpu.core_type<tc>} {
    %c0 = arith.constant 0 : index
    %c0_0 = arith.constant 0 : index
    %0 = vector.load %arg0[%c0, %c0_0] : memref<4x2880xf32, #tpu.memory_space<vmem>>, vector<4x2880xf32>
    %c0_1 = arith.constant 0 : index
    %c0_2 = arith.constant 0 : index
    %1 = vector.load %arg1[%c0_1, %c0_2] : memref<2880x100xf32, #tpu.memory_space<vmem>>, vector<2880x100xf32>
    %cst = arith.constant dense<0.000000e+00> : vector<4x100xf32>
    %2 = tpu.matmul %0, %1, %cst {dimension_numbers = #tpu.dot_dimension_numbers<[1], [0], [0], [1], [0, 0, 1, 1], [], []>} : vector<4x2880xf32>, vector<2880x100xf32>, vector<4x100xf32> -> vector<4x100xf32>
    %c0_3 = arith.constant 0 : index
    %c0_4 = arith.constant 0 : index
    %3 = vector.load %arg2[%c0_3, %c0_4] : memref<1x100xf32, #tpu.memory_space<vmem>>, vector<1x100xf32>
    %4 = vector.broadcast %3 : vector<1x100xf32> to vector<4x100xf32>
    %5 = arith.addf %2, %4 : vector<4x100xf32>
    %cst_5 = arith.constant 0.000000e+00 : f32
    %6 = vector.broadcast %cst_5 : f32 to vector<4x100xf32>
    %7 = arith.maximumf %5, %6 : vector<4x100xf32>
    %c0_6 = arith.constant 0 : index
    %c0_7 = arith.constant 0 : index
    %8 = vector.load %arg3[%c0_6, %c0_7] : memref<100x5xf32, #tpu.memory_space<vmem>>, vector<100x5xf32>
    %cst_8 = arith.constant dense<0.000000e+00> : vector<4x5xf32>
    %9 = tpu.matmul %7, %8, %cst_8 {dimension_numbers = #tpu.dot_dimension_numbers<[1], [0], [0], [1], [0, 0, 1, 1], [], []>} : vector<4x100xf32>, vector<100x5xf32>, vector<4x5xf32> -> vector<4x5xf32>
    %c0_9 = arith.constant 0 : index
    %c0_10 = arith.constant 0 : index
    %10 = vector.load %arg4[%c0_9, %c0_10] : memref<1x5xf32, #tpu.memory_space<vmem>>, vector<1x5xf32>
    %11 = vector.broadcast %10 : vector<1x5xf32> to vector<4x5xf32>
    %12 = arith.addf %9, %11 : vector<4x5xf32>
    %cst_11 = arith.constant dense<0xFF800000> : vector<4xf32>
    %13 = vector.multi_reduction <maximumf>, %12, %cst_11 [1] : vector<4x5xf32> to vector<4xf32>
    %14 = vector.shape_cast %13 : vector<4xf32> to vector<4x1xf32>
    %15 = vector.broadcast %14 : vector<4x1xf32> to vector<4x5xf32>
    %16 = arith.subf %12, %15 : vector<4x5xf32>
    %17 = math.exp %16 : vector<4x5xf32>
    %cst_12 = arith.constant dense<0.000000e+00> : vector<4xf32>
    %18 = vector.multi_reduction <add>, %17, %cst_12 [1] : vector<4x5xf32> to vector<4xf32>
    %19 = vector.shape_cast %18 : vector<4xf32> to vector<4x1xf32>
    %20 = vector.broadcast %19 : vector<4x1xf32> to vector<4x5xf32>
    %21 = arith.divf %17, %20 : vector<4x5xf32>
    %c0_13 = arith.constant 0 : index
    %c0_14 = arith.constant 0 : index
    %22 = vector.load %arg5[%c0_13, %c0_14] : memref<4x5xf32, #tpu.memory_space<vmem>>, vector<4x5xf32>
    tpu.vector_store %arg5[%c0_13, %c0_14], %21 {strides = array<i32>} : memref<4x5xf32, #tpu.memory_space<vmem>>, vector<4x5xf32>,
    return
  }
}

</mosaic_0001>

<bundles_post_ra>
// kernel: tpu_custom_call.1
= control target key start
LH: loop header
LB: loop body
LE: loop exit
PB: predicated region body
PF: predicated region fallthrough
CT: control target
= control target key end

     0   :  { %s2296_s0 = inlined_call_operand.vmem [shape: f32[4,2880], index: 0, kind: input, shape index: {}]   ;;  %s2297_s1 = inlined_call_operand.vmem [shape: f32[2880,100], index: 1, kind: input, shape index: {}]   ;;  %s2298_s2 = inlined_call_operand.vmem [shape: f32[1,100], index: 2, kind: input, shape index: {}]   ;;  %s2299_s3 = inlined_call_operand.vmem [shape: f32[100,5], index: 3, kind: input, shape index: {}]   ;;  %s2300_s4 = inlined_call_operand.vmem [shape: f32[1,5], index: 4, kind: input, shape index: {}]   ;;  %s2301_s5 = inlined_call_operand.hbm [shape: f32[4,5], index: 5, kind: output, shape index: {}]  }
   0x1   :  { %v48_v0 = vld [vmem:[%s2297_s1 + $0x78] sm:$0xff]  ;;  %v47_v2 = vld [vmem:[%s2297_s1 + $0x70] sm:$0xff]  ;;  %v46_v6 = vld [vmem:[%s2297_s1 + $0x68] sm:$0xff] }
   0x2   :  { %v80_v1 = vld [vmem:[%s2297_s1 + $0x178] sm:$0xff]  ;;  %472 = vmatpush.msra.mxu0 %v48_v0  ;;  %v79_v4 = vld [vmem:[%s2297_s1 + $0x170] sm:$0xff]  ;;  %v78_v8 = vld [vmem:[%s2297_s1 + $0x168] sm:$0xff] }
   0x3   :  { %512 = vmatpush.msra.mxu2 %v80_v1  ;;  %v64_v3 = vld [vmem:[%s2297_s1 + $0xf8] sm:$0xff]  ;;  %v63_v7 = vld [vmem:[%s2297_s1 + $0xf0] sm:$0xff]  ;;  %v62_v10 = vld [vmem:[%s2297_s1 + $0xe8] sm:$0xff] }
   0x4   :  { %v96_v5 = vld [vmem:[%s2297_s1 + $0x1f8] sm:$0xff]  ;;  %492 = vmatpush.msra.mxu1 %v64_v3  ;;  %473 = vmatpush.msra.mxu0 %v47_v2  ;;  %v95_v9 = vld [vmem:[%s2297_s1 + $0x1f0] sm:$0xff]  ;;  %v45_v11 = vld [vmem:[%s2297_s1 + $0x60] sm:$0xff] }
   0x5   :  { %532 = vmatpush.msra.mxu3 %v96_v5  ;;  %513 = vmatpush.msra.mxu2 %v79_v4  ;;  %v77_v12 = vld [vmem:[%s2297_s1 + $0x160] sm:$0xff]  ;;  %v94_v13 = vld [vmem:[%s2297_s1 + $0x1e8] sm:$0xff]  ;;  %v44_v16 = vld [vmem:[%s2297_s1 + $0x58] sm:$0xff] }
   0x6   :  { %493 = vmatpush.msra.mxu1 %v63_v7  ;;  %474 = vmatpush.msra.mxu0 %v46_v6  ;;  %v61_v14 = vld [vmem:[%s2297_s1 + $0xe0] sm:$0xff]  ;;  %v76_v17 = vld [vmem:[%s2297_s1 + $0x158] sm:$0xff]  ;;  %v43_v20 = vld [vmem:[%s2297_s1 + $0x50] sm:$0xff] }
   0x7   :  { %533 = vmatpush.msra.mxu3 %v95_v9  ;;  %514 = vmatpush.msra.mxu2 %v78_v8  ;;  %v93_v15 = vld [vmem:[%s2297_s1 + $0x1e0] sm:$0xff]  ;;  %v60_v18 = vld [vmem:[%s2297_s1 + $0xd8] sm:$0xff]  ;;  %v75_v21 = vld [vmem:[%s2297_s1 + $0x150] sm:$0xff] }
   0x8   :  { %494 = vmatpush.msra.mxu1 %v62_v10  ;;  %475 = vmatpush.msra.mxu0 %v45_v11  ;;  %v92_v19 = vld [vmem:[%s2297_s1 + $0x1d8] sm:$0xff]  ;;  %v59_v22 = vld [vmem:[%s2297_s1 + $0xd0] sm:$0xff]  ;;  %v42_v24 = vld [vmem:[%s2297_s1 + $0x48] sm:$0xff] }
   0x9   :  { %534 = vmatpush.msra.mxu3 %v94_v13  ;;  %515 = vmatpush.msra.mxu2 %v77_v12  ;;  %v91_v23 = vld [vmem:[%s2297_s1 + $0x1d0] sm:$0xff]  ;;  %v74_v25 = vld [vmem:[%s2297_s1 + $0x148] sm:$0xff]  ;;  %v41_v28 = vld [vmem:[%s2297_s1 + $0x40] sm:$0xff] }
   0xa   :  { %495 = vmatpush.msra.mxu1 %v61_v14  ;;  %476 = vmatpush.msra.mxu0 %v44_v16  ;;  %v58_v26 = vld [vmem:[%s2297_s1 + $0xc8] sm:$0xff]  ;;  %v73_v29 = vld [vmem:[%s2297_s1 + $0x140] sm:$0xff]  ;;  %v40_v32 = vld [vmem:[%s2297_s1 + $0x38] sm:$0xff] }
   0xb   :  { %535 = vmatpush.msra.mxu3 %v93_v15  ;;  %516 = vmatpush.msra.mxu2 %v76_v17  ;;  %v90_v27 = vld [vmem:[%s2297_s1 + $0x1c8] sm:$0xff]  ;;  %v57_v30 = vld [vmem:[%s2297_s1 + $0xc0] sm:$0xff]  ;;  %v72_v33 = vld [vmem:[%s2297_s1 + $0x138] sm:$0xff] }
   0xc   :  { %496 = vmatpush.msra.mxu1 %v60_v18  ;;  %477 = vmatpush.msra.mxu0 %v43_v20  ;;  %v89_v31 = vld [vmem:[%s2297_s1 + $0x1c0] sm:$0xff]  ;;  %v56_v34 = vld [vmem:[%s2297_s1 + $0xb8] sm:$0xff]  ;;  %v39_v36 = vld [vmem:[%s2297_s1 + $0x30] sm:$0xff] }
   0xd   :  { %536 = vmatpush.msra.mxu3 %v92_v19  ;;  %517 = vmatpush.msra.mxu2 %v75_v21  ;;  %v88_v35 = vld [vmem:[%s2297_s1 + $0x1b8] sm:$0xff]  ;;  %v71_v37 = vld [vmem:[%s2297_s1 + $0x130] sm:$0xff]  ;;  %v38_v40 = vld [vmem:[%s2297_s1 + $0x28] sm:$0xff] }
   0xe   :  { %497 = vmatpush.msra.mxu1 %v59_v22  ;;  %478 = vmatpush.msra.mxu0 %v42_v24  ;;  %v55_v38 = vld [vmem:[%s2297_s1 + $0xb0] sm:$0xff]  ;;  %v70_v41 = vld [vmem:[%s2297_s1 + $0x128] sm:$0xff]  ;;  %v37_v44 = vld [vmem:[%s2297_s1 + $0x20] sm:$0xff] }
   0xf   :  { %537 = vmatpush.msra.mxu3 %v91_v23  ;;  %518 = vmatpush.msra.mxu2 %v74_v25  ;;  %v87_v39 = vld [vmem:[%s2297_s1 + $0x1b0] sm:$0xff]  ;;  %v54_v42 = vld [vmem:[%s2297_s1 + $0xa8] sm:$0xff]  ;;  %v69_v45 = vld [vmem:[%s2297_s1 + $0x120] sm:$0xff] }
  0x10   :  { %498 = vmatpush.msra.mxu1 %v58_v26  ;;  %479 = vmatpush.msra.mxu0 %v41_v28  ;;  %v86_v43 = vld [vmem:[%s2297_s1 + $0x1a8] sm:$0xff]  ;;  %v53_v46 = vld [vmem:[%s2297_s1 + $0xa0] sm:$0xff]  ;;  %v36_v48 = vld [vmem:[%s2297_s1 + $0x18] sm:$0xff] }
  0x11   :  { %538 = vmatpush.msra.mxu3 %v90_v27  ;;  %519 = vmatpush.msra.mxu2 %v73_v29  ;;  %v85_v47 = vld [vmem:[%s2297_s1 + $0x1a0] sm:$0xff]  ;;  %v68_v49 = vld [vmem:[%s2297_s1 + $0x118] sm:$0xff]  ;;  %v35_v52 = vld [vmem:[%s2297_s1 + $0x10] sm:$0xff] }
  0x12   :  { %499 = vmatpush.msra.mxu1 %v57_v30  ;;  %480 = vmatpush.msra.mxu0 %v40_v32  ;;  %v52_v50 = vld [vmem:[%s2297_s1 + $0x98] sm:$0xff]  ;;  %v67_v53 = vld [vmem:[%s2297_s1 + $0x110] sm:$0xff]  ;;  %v34_v56 = vld [vmem:[%s2297_s1 + $0x8] sm:$0xff] }
  0x13   :  { %539 = vmatpush.msra.mxu3 %v89_v31  ;;  %520 = vmatpush.msra.mxu2 %v72_v33  ;;  %v84_v51 = vld [vmem:[%s2297_s1 + $0x198] sm:$0xff]  ;;  %v51_v54 = vld [vmem:[%s2297_s1 + $0x90] sm:$0xff]  ;;  %v66_v57 = vld [vmem:[%s2297_s1 + $0x108] sm:$0xff] }
  0x14   :  { %500 = vmatpush.msra.mxu1 %v56_v34  ;;  %481 = vmatpush.msra.mxu0 %v39_v36  ;;  %v83_v55 = vld [vmem:[%s2297_s1 + $0x190] sm:$0xff]  ;;  %v50_v58 = vld [vmem:[%s2297_s1 + $0x88] sm:$0xff]  ;;  %v33_v60 = vld [vmem:[%s2297_s1] sm:$0xff] }
  0x15   :  { %540 = vmatpush.msra.mxu3 %v88_v35  ;;  %521 = vmatpush.msra.mxu2 %v71_v37  ;;  %v82_v59 = vld [vmem:[%s2297_s1 + $0x188] sm:$0xff]  ;;  %v65_v61 = vld [vmem:[%s2297_s1 + $0x100] sm:$0xff]  ;;  %v112_v62 = vld [vmem:[%s2297_s1 + $0x278] sm:$0xff] }
  0x16   :  { %501 = vmatpush.msra.mxu1 %v55_v38  ;;  %482 = vmatpush.msra.mxu0 %v38_v40  ;;  %v144_v63 = vld [vmem:[%s2297_s1 + $0x378] sm:$0xff]  ;;  %v49_v0 = vld [vmem:[%s2297_s1 + $0x80] sm:$0xff]  ;;  %v111_v2 = vld [vmem:[%s2297_s1 + $0x270] sm:$0xff] }
  0x17   :  { %541 = vmatpush.msra.mxu3 %v87_v39  ;;  %522 = vmatpush.msra.mxu2 %v70_v41  ;;  %v81_v1 = vld [vmem:[%s2297_s1 + $0x180] sm:$0xff]  ;;  %v128_v3 = vld [vmem:[%s2297_s1 + $0x2f8] sm:$0xff]  ;;  %v143_v4 = vld [vmem:[%s2297_s1 + $0x370] sm:$0xff] }
  0x18   :  { %502 = vmatpush.msra.mxu1 %v54_v42  ;;  %483 = vmatpush.msra.mxu0 %v37_v44  ;;  %v160_v5 = vld [vmem:[%s2297_s1 + $0x3f8] sm:$0xff]  ;;  %v110_v6 = vld [vmem:[%s2297_s1 + $0x268] sm:$0xff]  ;;  %v127_v7 = vld [vmem:[%s2297_s1 + $0x2f0] sm:$0xff] }
  0x19   :  { %542 = vmatpush.msra.mxu3 %v86_v43  ;;  %523 = vmatpush.msra.mxu2 %v69_v45  ;;  %v142_v8 = vld [vmem:[%s2297_s1 + $0x368] sm:$0xff]  ;;  %v159_v9 = vld [vmem:[%s2297_s1 + $0x3f0] sm:$0xff]  ;;  %v109_v10 = vld [vmem:[%s2297_s1 + $0x260] sm:$0xff] }
  0x1a   :  { %503 = vmatpush.msra.mxu1 %v53_v46  ;;  %484 = vmatpush.msra.mxu0 %v36_v48  ;;  %v126_v11 = vld [vmem:[%s2297_s1 + $0x2e8] sm:$0xff]  ;;  %v141_v12 = vld [vmem:[%s2297_s1 + $0x360] sm:$0xff]  ;;  %v108_v14 = vld [vmem:[%s2297_s1 + $0x258] sm:$0xff] }
  0x1b   :  { %543 = vmatpush.msra.mxu3 %v85_v47  ;;  %524 = vmatpush.msra.mxu2 %v68_v49  ;;  %v158_v13 = vld [vmem:[%s2297_s1 + $0x3e8] sm:$0xff]  ;;  %v125_v15 = vld [vmem:[%s2297_s1 + $0x2e0] sm:$0xff]  ;;  %v140_v16 = vld [vmem:[%s2297_s1 + $0x358] sm:$0xff] }
  0x1c   :  { %504 = vmatpush.msra.mxu1 %v52_v50  ;;  %485 = vmatpush.msra.mxu0 %v35_v52  ;;  %v157_v17 = vld [vmem:[%s2297_s1 + $0x3e0] sm:$0xff]  ;;  %v107_v18 = vld [vmem:[%s2297_s1 + $0x250] sm:$0xff]  ;;  %v124_v19 = vld [vmem:[%s2297_s1 + $0x2d8] sm:$0xff] }
  0x1d   :  { %544 = vmatpush.msra.mxu3 %v84_v51  ;;  %525 = vmatpush.msra.mxu2 %v67_v53  ;;  %v139_v20 = vld [vmem:[%s2297_s1 + $0x350] sm:$0xff]  ;;  %v156_v21 = vld [vmem:[%s2297_s1 + $0x3d8] sm:$0xff]  ;;  %v22_v22 = vld [vmem:[%s2296_s0 + $0x8] sm:$0xff] }
  0x1e   :  { %505 = vmatpush.msra.mxu1 %v51_v54  ;;  %486 = vmatpush.msra.mxu0 %v34_v56  ;;  %v106_v23 = vld [vmem:[%s2297_s1 + $0x248] sm:$0xff]  ;;  %v123_v24 = vld [vmem:[%s2297_s1 + $0x2d0] sm:$0xff]  ;;  %411 = vst [vmem:[#allocation1 + $0x10] ss:$2 sm:$0xff] %v22_v22  ;;  %v105_v27 = vld [vmem:[%s2297_s1 + $0x240] sm:$0xff] }
  0x1f   :  { %545 = vmatpush.msra.mxu3 %v83_v55  ;;  %526 = vmatpush.msra.mxu2 %v66_v57  ;;  %v138_v25 = vld [vmem:[%s2297_s1 + $0x348] sm:$0xff]  ;;  %v155_v26 = vld [vmem:[%s2297_s1 + $0x3d0] sm:$0xff]  ;;  %v21_v28 = vld [vmem:[%s2296_s0] sm:$0xff] }
  0x20   :  { %506 = vmatpush.msra.mxu1 %v50_v58  ;;  %487 = vmatpush.msra.mxu0 %v33_v60  ;;  %v122_v29 = vld [vmem:[%s2297_s1 + $0x2c8] sm:$0xff]  ;;  %v137_v30 = vld [vmem:[%s2297_s1 + $0x340] sm:$0xff]  ;;  %409 = vst [vmem:[#allocation1] ss:$2 sm:$0xff] %v21_v28  ;;  %v104_v32 = vld [vmem:[%s2297_s1 + $0x238] sm:$0xff] }
  0x21   :  { %546 = vmatpush.msra.mxu3 %v82_v59  ;;  %527 = vmatpush.msra.mxu2 %v65_v61  ;;  %v154_v31 = vld [vmem:[%s2297_s1 + $0x3c8] sm:$0xff]  ;;  %v121_v33 = vld [vmem:[%s2297_s1 + $0x2c0] sm:$0xff]  ;;  %v136_v34 = vld [vmem:[%s2297_s1 + $0x338] sm:$0xff] }
  0x22   :  { %552 = vmatpush.msrb.mxu0 %v112_v62  ;;  %507 = vmatpush.msra.mxu1 %v49_v0  ;;  %v153_v35 = vld [vmem:[%s2297_s1 + $0x3c0] sm:$0xff]  ;;  %v103_v36 = vld [vmem:[%s2297_s1 + $0x230] sm:$0xff]  ;;  %v120_v37 = vld [vmem:[%s2297_s1 + $0x2b8] sm:$0xff] }
  0x23   :  { %592 = vmatpush.msrb.mxu2 %v144_v63  ;;  %547 = vmatpush.msra.mxu3 %v81_v1  ;;  %v135_v38 = vld [vmem:[%s2297_s1 + $0x330] sm:$0xff]  ;;  %v152_v39 = vld [vmem:[%s2297_s1 + $0x3b8] sm:$0xff]  ;;  %v26_v40 = vld [vmem:[%s2296_s0 + $0x28] sm:$0xff] }
  0x24   :  { %553 = vmatpush.msrb.mxu0 %v111_v2  ;;  %572 = vmatpush.msrb.mxu1 %v128_v3  ;;  %v102_v41 = vld [vmem:[%s2297_s1 + $0x228] sm:$0xff]  ;;  %v119_v42 = vld [vmem:[%s2297_s1 + $0x2b0] sm:$0xff]  ;;  %v25_v43 = vld [vmem:[%s2296_s0 + $0x20] sm:$0xff] }
  0x25   :  { %593 = vmatpush.msrb.mxu2 %v143_v4  ;;  %612 = vmatpush.msrb.mxu3 %v160_v5  ;;  %v1411_v44 = vld.sshfl [vmem:[#allocation1 + $0x10] sm:$0xff pattern:$0x75316420]  ;;  %v1413_v45 = vld.sshfl [vmem:[#allocation1 + $0x18] sm:$0xff pattern:$0x75316420] }
  0x26   :  { %554 = vmatpush.msrb.mxu0 %v110_v6  ;;  %573 = vmatpush.msrb.mxu1 %v127_v7  ;;  %v134_v46 = vld [vmem:[%s2297_s1 + $0x328] sm:$0xff]  ;;  %v151_v47 = vld [vmem:[%s2297_s1 + $0x3b0] sm:$0xff]  ;;  %425 = vst [vmem:[#allocation1 + $0x10] ss:$2 sm:$0xff] %v26_v40  ;;  %v24_v48 = vld [vmem:[%s2296_s0 + $0x18] sm:$0xff] }
  0x27   :  { %594 = vmatpush.msrb.mxu2 %v142_v8  ;;  %613 = vmatpush.msrb.mxu3 %v159_v9  ;;  %v1424_v49 = vld.sshfl [vmem:[#allocation1] sm:$0xff pattern:$0x75316420]  ;;  %v1426_v50 = vld.sshfl [vmem:[#allocation1 + $0x8] sm:$0xff pattern:$0x75316420] }
  0x28   :  { %555 = vmatpush.msrb.mxu0 %v109_v10  ;;  %574 = vmatpush.msrb.mxu1 %v126_v11  ;;  %v101_v51 = vld [vmem:[%s2297_s1 + $0x220] sm:$0xff]  ;;  %v118_v52 = vld [vmem:[%s2297_s1 + $0x2a8] sm:$0xff]  ;;  %424 = vst [vmem:[#allocation1] ss:$2 sm:$0xff] %v25_v43  ;;  %v23_v53 = vld [vmem:[%s2296_s0 + $0x10] sm:$0xff] }
  0x29   :  { %595 = vmatpush.msrb.mxu2 %v141_v12  ;;  %614 = vmatpush.msrb.mxu3 %v158_v13  ;;  %v133_v54 = vld [vmem:[%s2297_s1 + $0x320] sm:$0xff]  ;;  %v150_v55 = vld [vmem:[%s2297_s1 + $0x3a8] sm:$0xff]  ;;  %415 = vst [vmem:[#allocation1 + $0x30] ss:$2 sm:$0xff] %v24_v48  ;;  %v100_v56 = vld [vmem:[%s2297_s1 + $0x218] sm:$0xff] }
  0x2a   :  { %556 = vmatpush.msrb.mxu0 %v108_v14  ;;  %575 = vmatpush.msrb.mxu1 %v125_v15  ;;  %v117_v57 = vld [vmem:[%s2297_s1 + $0x2a0] sm:$0xff]  ;;  %413 = vst [vmem:[#allocation1 + $0x20] ss:$2 sm:$0xff] %v23_v53  ;;  %v132_v58 = vld [vmem:[%s2297_s1 + $0x318] sm:$0xff]  ;;  %v99_v60 = vld [vmem:[%s2297_s1 + $0x210] sm:$0xff] }
  0x2b   :  { %596 = vmatpush.msrb.mxu2 %v140_v16  ;;  %615 = vmatpush.msrb.mxu3 %v157_v17  ;;  %v149_v59 = vld [vmem:[%s2297_s1 + $0x3a0] sm:$0xff]  ;;  %v116_v61 = vld [vmem:[%s2297_s1 + $0x298] sm:$0xff]  ;;  %v131_v62 = vld [vmem:[%s2297_s1 + $0x310] sm:$0xff] }
  0x2c   :  { %557 = vmatpush.msrb.mxu0 %v107_v18  ;;  %576 = vmatpush.msrb.mxu1 %v124_v19  ;;  %v148_v63 = vld [vmem:[%s2297_s1 + $0x398] sm:$0xff]  ;;  %v98_v0 = vld [vmem:[%s2297_s1 + $0x208] sm:$0xff]  ;;  %v115_v1 = vld [vmem:[%s2297_s1 + $0x290] sm:$0xff] }
  0x2d   :  { %597 = vmatpush.msrb.mxu2 %v139_v20  ;;  %616 = vmatpush.msrb.mxu3 %v156_v21  ;;  %v130_v2 = vld [vmem:[%s2297_s1 + $0x308] sm:$0xff]  ;;  %v28_v3 = vld [vmem:[%s2296_s0 + $0x38] sm:$0xff]  ;;  %v147_v4 = vld [vmem:[%s2297_s1 + $0x390] sm:$0xff] }
  0x2e   :  { %558 = vmatpush.msrb.mxu0 %v106_v23  ;;  %577 = vmatpush.msrb.mxu1 %v123_v24  ;;  %v97_v5 = vld [vmem:[%s2297_s1 + $0x200] sm:$0xff]  ;;  %v27_v6 = vld [vmem:[%s2296_s0 + $0x30] sm:$0xff]  ;;  %v114_v9 = vld [vmem:[%s2297_s1 + $0x288] sm:$0xff] }
  0x2f   :  { %598 = vmatpush.msrb.mxu2 %v138_v25  ;;  %617 = vmatpush.msrb.mxu3 %v155_v26  ;;  %v129_v10 = vld [vmem:[%s2297_s1 + $0x300] sm:$0xff]  ;;  %v146_v11 = vld [vmem:[%s2297_s1 + $0x388] sm:$0xff]  ;;  %v176_v14 = vld [vmem:[%s2297_s1 + $0x478] sm:$0xff] }
  0x30   :  { %559 = vmatpush.msrb.mxu0 %v105_v27  ;;  %578 = vmatpush.msrb.mxu1 %v122_v29  ;;  %v422_v7 = vld.sshfl [vmem:[#allocation1 + $0x30] sm:$0xff pattern:$0x75316420]  ;;  %v1488_v8 = vld.sshfl [vmem:[#allocation1 + $0x38] sm:$0xff pattern:$0x75316420] }
  0x31   :  { %599 = vmatpush.msrb.mxu2 %v137_v30  ;;  %618 = vmatpush.msrb.mxu3 %v154_v31  ;;  %427 = vst [vmem:[#allocation1 + $0x30] ss:$2 sm:$0xff] %v28_v3  ;;  %v420_v12 = vld.sshfl [vmem:[#allocation1 + $0x20] sm:$0xff pattern:$0x75316420]  ;;  %v208_v15 = vld [vmem:[%s2297_s1 + $0x578] sm:$0xff] }
  0x32   :  { %560 = vmatpush.msrb.mxu0 %v104_v32  ;;  %579 = vmatpush.msrb.mxu1 %v121_v33  ;;  %v1499_v13 = vld.sshfl [vmem:[#allocation1 + $0x28] sm:$0xff pattern:$0x75316420]  ;;  %v113_v16 = vld [vmem:[%s2297_s1 + $0x280] sm:$0xff]  ;;  %v175_v18 = vld [vmem:[%s2297_s1 + $0x470] sm:$0xff] }
  0x33   :  { %600 = vmatpush.msrb.mxu2 %v136_v34  ;;  %619 = vmatpush.msrb.mxu3 %v153_v35  ;;  %426 = vst [vmem:[#allocation1 + $0x20] ss:$2 sm:$0xff] %v27_v6  ;;  %v145_v17 = vld [vmem:[%s2297_s1 + $0x380] sm:$0xff]  ;;  %v192_v19 = vld [vmem:[%s2297_s1 + $0x4f8] sm:$0xff]  ;;  %v207_v20 = vld [vmem:[%s2297_s1 + $0x570] sm:$0xff] }
  0x34   :  { %561 = vmatpush.msrb.mxu0 %v103_v36  ;;  %580 = vmatpush.msrb.mxu1 %v120_v37  ;;  %v224_v21 = vld [vmem:[%s2297_s1 + $0x5f8] sm:$0xff]  ;;  %v174_v22 = vld [vmem:[%s2297_s1 + $0x468] sm:$0xff]  ;;  %v191_v23 = vld [vmem:[%s2297_s1 + $0x4f0] sm:$0xff] }
  0x35   :  { %601 = vmatpush.msrb.mxu2 %v135_v38  ;;  %620 = vmatpush.msrb.mxu3 %v152_v39  ;;  %v206_v24 = vld [vmem:[%s2297_s1 + $0x568] sm:$0xff]  ;;  %v223_v25 = vld [vmem:[%s2297_s1 + $0x5f0] sm:$0xff]  ;;  %v173_v26 = vld [vmem:[%s2297_s1 + $0x460] sm:$0xff] }
  0x36   :  { %562 = vmatpush.msrb.mxu0 %v102_v41  ;;  %581 = vmatpush.msrb.mxu1 %v119_v42  ;;  %v190_v27 = vld [vmem:[%s2297_s1 + $0x4e8] sm:$0xff]  ;;  %v205_v28 = vld [vmem:[%s2297_s1 + $0x560] sm:$0xff]  ;;  %v172_v30 = vld [vmem:[%s2297_s1 + $0x458] sm:$0xff] }
  0x37   :  { %602 = vmatpush.msrb.mxu2 %v134_v46  ;;  %621 = vmatpush.msrb.mxu3 %v151_v47  ;;  %v222_v29 = vld [vmem:[%s2297_s1 + $0x5e8] sm:$0xff]  ;;  %v189_v31 = vld [vmem:[%s2297_s1 + $0x4e0] sm:$0xff]  ;;  %v1561_v33 = vld.sshfl [vmem:[#allocation1 + $0x10] sm:$0xff pattern:$0x75316420] }
  0x38   :  { %563 = vmatpush.msrb.mxu0 %v101_v51  ;;  %582 = vmatpush.msrb.mxu1 %v118_v52  ;;  %v1559_v32 = vld.sshfl [vmem:[#allocation1] sm:$0xff pattern:$0x75316420]  ;;  %v204_v34 = vld [vmem:[%s2297_s1 + $0x558] sm:$0xff]  ;;  %v30_v37 = vld [vmem:[%s2296_s0 + $0x48] sm:$0xff] }
  0x39   :  { %603 = vmatpush.msrb.mxu2 %v133_v54  ;;  %622 = vmatpush.msrb.mxu3 %v150_v55  ;;  %v29_v35 = vld [vmem:[%s2296_s0 + $0x40] sm:$0xff]  ;;  %v1569_v36 = vld.sshfl [vmem:[#allocation1 + $0x8] sm:$0xff pattern:$0x75316420]  ;;  %v171_v40 = vld [vmem:[%s2297_s1 + $0x450] sm:$0xff] }
  0x3a   :  { %564 = vmatpush.msrb.mxu0 %v100_v56  ;;  %583 = vmatpush.msrb.mxu1 %v117_v57  ;;  %436 = vst [vmem:[#allocation1] ss:$2 sm:$0xff] %v29_v35  ;;  %v1574_v38 = vld.sshfl [vmem:[#allocation1 + $0x18] sm:$0xff pattern:$0x75316420]  ;;  %v221_v39 = vld [vmem:[%s2297_s1 + $0x5e0] sm:$0xff] }
  0x3b   :  { %604 = vmatpush.msrb.mxu2 %v132_v58  ;;  %623 = vmatpush.msrb.mxu3 %v149_v59  ;;  %437 = vst [vmem:[#allocation1 + $0x10] ss:$2 sm:$0xff] %v30_v37  ;;  %v188_v41 = vld [vmem:[%s2297_s1 + $0x4d8] sm:$0xff]  ;;  %v203_v42 = vld [vmem:[%s2297_s1 + $0x550] sm:$0xff]  ;;  %v202_v46 = vld [vmem:[%s2297_s1 + $0x548] sm:$0xff] }
  0x3c   :  { %565 = vmatpush.msrb.mxu0 %v99_v60  ;;  %584 = vmatpush.msrb.mxu1 %v116_v61  ;;  %v220_v43 = vld [vmem:[%s2297_s1 + $0x5d8] sm:$0xff]  ;;  %v219_v47 = vld [vmem:[%s2297_s1 + $0x5d0] sm:$0xff]  ;;  %v169_v48 = vld [vmem:[%s2297_s1 + $0x440] sm:$0xff] }
  0x3d   :  { %605 = vmatpush.msrb.mxu2 %v131_v62  ;;  %624 = vmatpush.msrb.mxu3 %v148_v63  ;;  %v218_v51 = vld [vmem:[%s2297_s1 + $0x5c8] sm:$0xff]  ;;  %v168_v52 = vld [vmem:[%s2297_s1 + $0x438] sm:$0xff]  ;;  %v185_v53 = vld [vmem:[%s2297_s1 + $0x4c0] sm:$0xff] }
  0x3e   :  { %566 = vmatpush.msrb.mxu0 %v98_v0  ;;  %585 = vmatpush.msrb.mxu1 %v115_v1 }
  0x3f   :  { %606 = vmatpush.msrb.mxu2 %v130_v2  ;;  %625 = vmatpush.msrb.mxu3 %v147_v4 }
  0x40   :  { %528 = vmatmul.f32.vlgmr.msra.gmra.mxu2 %v1411_v44  ;;  %567 = vmatpush.msrb.mxu0 %v97_v5  ;;  %v170_v44 = vld [vmem:[%s2297_s1 + $0x448] sm:$0xff] }
  0x41   :  { %586 = vmatpush.msrb.mxu1 %v114_v9  ;;  %607 = vmatpush.msrb.mxu2 %v129_v10 }
  0x42   :  { %626 = vmatpush.msrb.mxu3 %v146_v11  ;;  %488 = vmatmul.f32.vlgmr.msra.gmra.mxu0 %v1424_v49  ;;  %v186_v49 = vld [vmem:[%s2297_s1 + $0x4c8] sm:$0xff] }
  0x43   :  { %548 = vmatmul.f32.vlgmr.msra.gmra.mxu3 %v1413_v45  ;;  %632 = vmatpush.msra.mxu0 %v176_v14  ;;  %v187_v45 = vld [vmem:[%s2297_s1 + $0x4d0] sm:$0xff] }
  0x44   :  { %672 = vmatpush.msra.mxu2 %v208_v15  ;;  %587 = vmatpush.msrb.mxu1 %v113_v16 }
  0x45   :  { %627 = vmatpush.msrb.mxu3 %v145_v17  ;;  %508 = vmatmul.f32.vlgmr.msra.gmra.mxu1 %v1426_v50  ;;  %v201_v50 = vld [vmem:[%s2297_s1 + $0x540] sm:$0xff] }
  0x46   :  { %633 = vmatpush.msra.mxu0 %v175_v18  ;;  %652 = vmatpush.msra.mxu1 %v192_v19 }
  0x47   :  { %673 = vmatpush.msra.mxu2 %v207_v20  ;;  %692 = vmatpush.msra.mxu3 %v224_v21 }
  0x48   :  { %634 = vmatpush.msra.mxu0 %v174_v22  ;;  %653 = vmatpush.msra.mxu1 %v191_v23 }
  0x49   :  { %674 = vmatpush.msra.mxu2 %v206_v24  ;;  %693 = vmatpush.msra.mxu3 %v223_v25 }
  0x4a   :  { %608 = vmatmul.f32.vlgmr.msrb.gmra.mxu2 %v422_v7  ;;  %635 = vmatpush.msra.mxu0 %v173_v26 }
  0x4b   :  { %654 = vmatpush.msra.mxu1 %v190_v27  ;;  %675 = vmatpush.msra.mxu2 %v205_v28 }
  0x4c   :  { %694 = vmatpush.msra.mxu3 %v222_v29  ;;  %568 = vmatmul.f32.vlgmr.msrb.gmra.mxu0 %v420_v12 }
  0x4d   :  { %628 = vmatmul.f32.vlgmr.msrb.gmra.mxu3 %v1488_v8  ;;  %636 = vmatpush.msra.mxu0 %v172_v30 }
  0x4e   :  { %655 = vmatpush.msra.mxu1 %v189_v31  ;;  %676 = vmatpush.msra.mxu2 %v204_v34 }
  0x4f   :  { %695 = vmatpush.msra.mxu3 %v221_v39  ;;  %588 = vmatmul.f32.vlgmr.msrb.gmra.mxu1 %v1499_v13 }
  0x50   :  { %637 = vmatpush.msra.mxu0 %v171_v40  ;;  %656 = vmatpush.msra.mxu1 %v188_v41 }
  0x51   :  { %677 = vmatpush.msra.mxu2 %v203_v42  ;;  %696 = vmatpush.msra.mxu3 %v220_v43 }
  0x52   :  { %638 = vmatpush.msra.mxu0 %v170_v44  ;;  %657 = vmatpush.msra.mxu1 %v187_v45 }
  0x53   :  { %678 = vmatpush.msra.mxu2 %v202_v46  ;;  %697 = vmatpush.msra.mxu3 %v219_v47 }
  0x54   :  { %10 = vsyncpa [#allocation3], 0  ;;  %639 = vmatpush.msra.mxu0 %v169_v48  ;;  %658 = vmatpush.msra.mxu1 %v186_v49  ;;  %v200_v54 = vld [vmem:[%s2297_s1 + $0x538] sm:$0xff]  ;;  %v217_v55 = vld [vmem:[%s2297_s1 + $0x5c0] sm:$0xff]  ;;  %vm469_vm0 = vcmask 523264   ;;  %vm954_vm1 = vcmask 1043456  }
  0x55   :  { %679 = vmatpush.msra.mxu2 %v201_v50  ;;  %698 = vmatpush.msra.mxu3 %v218_v51  ;;  %v167_v56 = vld [vmem:[%s2297_s1 + $0x430] sm:$0xff]  ;;  %v184_v57 = vld [vmem:[%s2297_s1 + $0x4b8] sm:$0xff]  ;;  %v166_v60 = vld [vmem:[%s2297_s1 + $0x428] sm:$0xff]  ;;  %vm950_vm2 = vcmask 818176   ;;  %vm978_vm3 = vcmask 35840  }
  0x56   :  { %640 = vmatpush.msra.mxu0 %v168_v52  ;;  %659 = vmatpush.msra.mxu1 %v185_v53  ;;  %v199_v58 = vld [vmem:[%s2297_s1 + $0x530] sm:$0xff]  ;;  %v216_v59 = vld [vmem:[%s2297_s1 + $0x5b8] sm:$0xff]  ;;  %v198_v62 = vld [vmem:[%s2297_s1 + $0x528] sm:$0xff] }
  0x57   :  { %680 = vmatpush.msra.mxu2 %v200_v54  ;;  %699 = vmatpush.msra.mxu3 %v217_v55  ;;  %v183_v61 = vld [vmem:[%s2297_s1 + $0x4b0] sm:$0xff]  ;;  %v165_v0 = vld [vmem:[%s2297_s1 + $0x420] sm:$0xff]  ;;  %v182_v1 = vld [vmem:[%s2297_s1 + $0x4a8] sm:$0xff] }
  0x58   :  { %641 = vmatpush.msra.mxu0 %v167_v56  ;;  %660 = vmatpush.msra.mxu1 %v184_v57  ;;  %v215_v63 = vld [vmem:[%s2297_s1 + $0x5b0] sm:$0xff]  ;;  %v197_v2 = vld [vmem:[%s2297_s1 + $0x520] sm:$0xff]  ;;  %v214_v3 = vld [vmem:[%s2297_s1 + $0x5a8] sm:$0xff] }
  0x59   :  { %681 = vmatpush.msra.mxu2 %v199_v58  ;;  %700 = vmatpush.msra.mxu3 %v216_v59  ;;  %v164_v4 = vld [vmem:[%s2297_s1 + $0x418] sm:$0xff]  ;;  %v181_v5 = vld [vmem:[%s2297_s1 + $0x4a0] sm:$0xff]  ;;  %v163_v8 = vld [vmem:[%s2297_s1 + $0x410] sm:$0xff] }
  0x5a   :  { %642 = vmatpush.msra.mxu0 %v166_v60  ;;  %661 = vmatpush.msra.mxu1 %v183_v61  ;;  %v196_v6 = vld [vmem:[%s2297_s1 + $0x518] sm:$0xff]  ;;  %v213_v7 = vld [vmem:[%s2297_s1 + $0x5a0] sm:$0xff]  ;;  %v195_v10 = vld [vmem:[%s2297_s1 + $0x510] sm:$0xff] }
  0x5b   :  { %682 = vmatpush.msra.mxu2 %v198_v62  ;;  %701 = vmatpush.msra.mxu3 %v215_v63  ;;  %v180_v9 = vld [vmem:[%s2297_s1 + $0x498] sm:$0xff]  ;;  %v162_v12 = vld [vmem:[%s2297_s1 + $0x408] sm:$0xff]  ;;  %v179_v13 = vld [vmem:[%s2297_s1 + $0x490] sm:$0xff] }
  0x5c   :  { %643 = vmatpush.msra.mxu0 %v165_v0  ;;  %662 = vmatpush.msra.mxu1 %v182_v1  ;;  %v212_v11 = vld [vmem:[%s2297_s1 + $0x598] sm:$0xff]  ;;  %v194_v14 = vld [vmem:[%s2297_s1 + $0x508] sm:$0xff]  ;;  %v211_v15 = vld [vmem:[%s2297_s1 + $0x590] sm:$0xff] }
  0x5d   :  { %683 = vmatpush.msra.mxu2 %v197_v2  ;;  %702 = vmatpush.msra.mxu3 %v214_v3  ;;  %v161_v16 = vld [vmem:[%s2297_s1 + $0x400] sm:$0xff]  ;;  %v178_v17 = vld [vmem:[%s2297_s1 + $0x488] sm:$0xff]  ;;  %v240_v20 = vld [vmem:[%s2297_s1 + $0x678] sm:$0xff] }
  0x5e   :  { %644 = vmatpush.msra.mxu0 %v164_v4  ;;  %663 = vmatpush.msra.mxu1 %v181_v5  ;;  %v193_v18 = vld [vmem:[%s2297_s1 + $0x500] sm:$0xff]  ;;  %v210_v19 = vld [vmem:[%s2297_s1 + $0x588] sm:$0xff]  ;;  %v272_v21 = vld [vmem:[%s2297_s1 + $0x778] sm:$0xff] }
  0x5f   :  { %684 = vmatpush.msra.mxu2 %v196_v6  ;;  %703 = vmatpush.msra.mxu3 %v213_v7  ;;  %v177_v22 = vld [vmem:[%s2297_s1 + $0x480] sm:$0xff]  ;;  %v239_v24 = vld [vmem:[%s2297_s1 + $0x670] sm:$0xff]  ;;  %v256_v25 = vld [vmem:[%s2297_s1 + $0x6f8] sm:$0xff] }
  0x60   :  { %645 = vmatpush.msra.mxu0 %v163_v8  ;;  %664 = vmatpush.msra.mxu1 %v180_v9  ;;  %v209_v23 = vld [vmem:[%s2297_s1 + $0x580] sm:$0xff]  ;;  %v271_v26 = vld [vmem:[%s2297_s1 + $0x770] sm:$0xff]  ;;  %v288_v27 = vld [vmem:[%s2297_s1 + $0x7f8] sm:$0xff] }
  0x61   :  { %685 = vmatpush.msra.mxu2 %v195_v10  ;;  %704 = vmatpush.msra.mxu3 %v212_v11  ;;  %v238_v28 = vld [vmem:[%s2297_s1 + $0x668] sm:$0xff]  ;;  %v255_v29 = vld [vmem:[%s2297_s1 + $0x6f0] sm:$0xff]  ;;  %v269_v37 = vld [vmem:[%s2297_s1 + $0x760] sm:$0xff] }
  0x62   :  { %646 = vmatpush.msra.mxu0 %v162_v12  ;;  %665 = vmatpush.msra.mxu1 %v179_v13  ;;  %v270_v30 = vld [vmem:[%s2297_s1 + $0x768] sm:$0xff]  ;;  %v287_v31 = vld [vmem:[%s2297_s1 + $0x7f0] sm:$0xff]  ;;  %v32_v39 = vld [vmem:[%s2296_s0 + $0x58] sm:$0xf] }
  0x63   :  { %686 = vmatpush.msra.mxu2 %v194_v14  ;;  %705 = vmatpush.msra.mxu3 %v211_v15  ;;  %v254_v34 = vld [vmem:[%s2297_s1 + $0x6e8] sm:$0xff]  ;;  %v31_v35 = vld [vmem:[%s2296_s0 + $0x50] sm:$0xff]  ;;  %v1777_v41 = vld.sshfl [vmem:[#allocation1 + $0x38] sm:$0xff pattern:$0x75316420] }
  0x64   :  { %647 = vmatpush.msra.mxu0 %v161_v16  ;;  %666 = vmatpush.msra.mxu1 %v178_v17  ;;  %v1775_v40 = vld.sshfl [vmem:[#allocation1 + $0x30] sm:$0xff pattern:$0x75316420]  ;;  %v236_v42 = vld [vmem:[%s2297_s1 + $0x658] sm:$0xff]  ;;  %v253_v43 = vld [vmem:[%s2297_s1 + $0x6e0] sm:$0xff] }
  0x65   :  { %687 = vmatpush.msra.mxu2 %v193_v18  ;;  %706 = vmatpush.msra.mxu3 %v210_v19  ;;  %439 = vst [vmem:[#allocation1 + $0x30] ss:$2 sm:$0xff] %v32_v39  ;;  %v268_v44 = vld [vmem:[%s2297_s1 + $0x758] sm:$0xff]  ;;  %v285_v45 = vld [vmem:[%s2297_s1 + $0x7e0] sm:$0xff]  ;;  %v235_v46 = vld [vmem:[%s2297_s1 + $0x650] sm:$0xff] }
  0x66   :  { %648 = vmatmul.f32.vlgmr.msra.gmra.mxu0 %v1559_v32  ;;  %688 = vmatmul.f32.vlgmr.msra.gmra.mxu2 %v1561_v33  ;;  %v237_v32 = vld [vmem:[%s2297_s1 + $0x660] sm:$0xff]  ;;  %v252_v47 = vld [vmem:[%s2297_s1 + $0x6d8] sm:$0xff]  ;;  %v267_v48 = vld [vmem:[%s2297_s1 + $0x750] sm:$0xff] }
  0x67   :  { %712 = vmatpush.msrb.mxu0 %v240_v20  ;;  %752 = vmatpush.msrb.mxu2 %v272_v21  ;;  %v1756_v33 = vld.sshfl [vmem:[#allocation1 + $0x20] sm:$0xff pattern:$0x75316420]  ;;  %v284_v49 = vld [vmem:[%s2297_s1 + $0x7d8] sm:$0xff]  ;;  %v234_v50 = vld [vmem:[%s2297_s1 + $0x648] sm:$0xff] }
  0x68   :  { %667 = vmatpush.msra.mxu1 %v177_v22  ;;  %707 = vmatpush.msra.mxu3 %v209_v23  ;;  %v251_v51 = vld [vmem:[%s2297_s1 + $0x6d0] sm:$0xff]  ;;  %v266_v52 = vld [vmem:[%s2297_s1 + $0x748] sm:$0xff]  ;;  %v233_v54 = vld [vmem:[%s2297_s1 + $0x640] sm:$0xff] }
  0x69   :  { %668 = vmatmul.f32.vlgmr.msra.gmra.mxu1 %v1569_v36  ;;  %708 = vmatmul.f32.vlgmr.msra.gmra.mxu3 %v1574_v38  ;;  %v1764_v36 = vld.sshfl [vmem:[#allocation1 + $0x28] sm:$0xff pattern:$0x75316420]  ;;  %v283_v53 = vld [vmem:[%s2297_s1 + $0x7d0] sm:$0xff]  ;;  %v265_v56 = vld [vmem:[%s2297_s1 + $0x740] sm:$0xff] }
  0x6a   :  { %713 = vmatpush.msrb.mxu0 %v239_v24  ;;  %732 = vmatpush.msrb.mxu1 %v256_v25  ;;  %v286_v38 = vld [vmem:[%s2297_s1 + $0x7e8] sm:$0xff]  ;;  %438 = vst [vmem:[#allocation1 + $0x20] ss:$2 sm:$0xff] %v31_v35  ;;  %v232_v58 = vld [vmem:[%s2297_s1 + $0x638] sm:$0xff]  ;;  %v249_v59 = vld [vmem:[%s2297_s1 + $0x6c0] sm:$0xff] }
  0x6b   :  { %753 = vmatpush.msrb.mxu2 %v271_v26  ;;  %772 = vmatpush.msrb.mxu3 %v288_v27  ;;  %v250_v55 = vld [vmem:[%s2297_s1 + $0x6c8] sm:$0xff]  ;;  %v264_v60 = vld [vmem:[%s2297_s1 + $0x738] sm:$0xff]  ;;  %v281_v61 = vld [vmem:[%s2297_s1 + $0x7c0] sm:$0xff] }
  0x6c   :  { %714 = vmatpush.msrb.mxu0 %v238_v28  ;;  %733 = vmatpush.msrb.mxu1 %v255_v29  ;;  %v282_v57 = vld [vmem:[%s2297_s1 + $0x7c8] sm:$0xff]  ;;  %v231_v62 = vld [vmem:[%s2297_s1 + $0x630] sm:$0xff]  ;;  %v248_v63 = vld [vmem:[%s2297_s1 + $0x6b8] sm:$0xff] }
  0x6d   :  { %754 = vmatpush.msrb.mxu2 %v270_v30  ;;  %773 = vmatpush.msrb.mxu3 %v287_v31  ;;  %v263_v0 = vld [vmem:[%s2297_s1 + $0x730] sm:$0xff]  ;;  %v280_v1 = vld [vmem:[%s2297_s1 + $0x7b8] sm:$0xff]  ;;  %v230_v2 = vld [vmem:[%s2297_s1 + $0x628] sm:$0xff] }
  0x6e   :  { %715 = vmatpush.msrb.mxu0 %v237_v32  ;;  %734 = vmatpush.msrb.mxu1 %v254_v34  ;;  %v247_v3 = vld [vmem:[%s2297_s1 + $0x6b0] sm:$0xff]  ;;  %v262_v4 = vld [vmem:[%s2297_s1 + $0x728] sm:$0xff]  ;;  %v229_v6 = vld [vmem:[%s2297_s1 + $0x620] sm:$0xff] }
  0x6f   :  { %755 = vmatpush.msrb.mxu2 %v269_v37  ;;  %774 = vmatpush.msrb.mxu3 %v286_v38  ;;  %v279_v5 = vld [vmem:[%s2297_s1 + $0x7b0] sm:$0xff]  ;;  %v246_v7 = vld [vmem:[%s2297_s1 + $0x6a8] sm:$0xff]  ;;  %v261_v8 = vld [vmem:[%s2297_s1 + $0x720] sm:$0xff] }
  0x70   :  { %716 = vmatpush.msrb.mxu0 %v236_v42  ;;  %735 = vmatpush.msrb.mxu1 %v253_v43  ;;  %v278_v9 = vld [vmem:[%s2297_s1 + $0x7a8] sm:$0xff]  ;;  %v228_v10 = vld [vmem:[%s2297_s1 + $0x618] sm:$0xff]  ;;  %v245_v11 = vld [vmem:[%s2297_s1 + $0x6a0] sm:$0xff] }
  0x71   :  { %756 = vmatpush.msrb.mxu2 %v268_v44  ;;  %775 = vmatpush.msrb.mxu3 %v285_v45  ;;  %v260_v12 = vld [vmem:[%s2297_s1 + $0x718] sm:$0xff]  ;;  %v277_v13 = vld [vmem:[%s2297_s1 + $0x7a0] sm:$0xff]  ;;  %v227_v14 = vld [vmem:[%s2297_s1 + $0x610] sm:$0xff] }
  0x72   :  { %717 = vmatpush.msrb.mxu0 %v235_v46  ;;  %736 = vmatpush.msrb.mxu1 %v252_v47  ;;  %v244_v15 = vld [vmem:[%s2297_s1 + $0x698] sm:$0xff]  ;;  %v259_v16 = vld [vmem:[%s2297_s1 + $0x710] sm:$0xff]  ;;  %v226_v18 = vld [vmem:[%s2297_s1 + $0x608] sm:$0xff] }
  0x73   :  { %757 = vmatpush.msrb.mxu2 %v267_v48  ;;  %776 = vmatpush.msrb.mxu3 %v284_v49  ;;  %v276_v17 = vld [vmem:[%s2297_s1 + $0x798] sm:$0xff]  ;;  %v243_v19 = vld [vmem:[%s2297_s1 + $0x690] sm:$0xff]  ;;  %v258_v20 = vld [vmem:[%s2297_s1 + $0x708] sm:$0xff] }
  0x74   :  { %718 = vmatpush.msrb.mxu0 %v234_v50  ;;  %737 = vmatpush.msrb.mxu1 %v251_v51  ;;  %v275_v21 = vld [vmem:[%s2297_s1 + $0x790] sm:$0xff]  ;;  %v225_v22 = vld [vmem:[%s2297_s1 + $0x600] sm:$0xff]  ;;  %v242_v23 = vld [vmem:[%s2297_s1 + $0x688] sm:$0xff] }
  0x75   :  { %758 = vmatpush.msrb.mxu2 %v266_v52  ;;  %777 = vmatpush.msrb.mxu3 %v283_v53  ;;  %v257_v24 = vld [vmem:[%s2297_s1 + $0x700] sm:$0xff]  ;;  %v274_v25 = vld [vmem:[%s2297_s1 + $0x788] sm:$0xff]  ;;  %v304_v26 = vld [vmem:[%s2297_s1 + $0x878] sm:$0xff] }
  0x76   :  { %719 = vmatpush.msrb.mxu0 %v233_v54  ;;  %738 = vmatpush.msrb.mxu1 %v250_v55  ;;  %v336_v27 = vld [vmem:[%s2297_s1 + $0x978] sm:$0xff]  ;;  %v241_v28 = vld [vmem:[%s2297_s1 + $0x680] sm:$0xff]  ;;  %v303_v30 = vld [vmem:[%s2297_s1 + $0x870] sm:$0xff] }
  0x77   :  { %759 = vmatpush.msrb.mxu2 %v265_v56  ;;  %778 = vmatpush.msrb.mxu3 %v282_v57  ;;  %v273_v29 = vld [vmem:[%s2297_s1 + $0x780] sm:$0xff]  ;;  %v320_v31 = vld [vmem:[%s2297_s1 + $0x8f8] sm:$0xff]  ;;  %v335_v32 = vld [vmem:[%s2297_s1 + $0x970] sm:$0xff] }
  0x78   :  { %720 = vmatpush.msrb.mxu0 %v232_v58  ;;  %739 = vmatpush.msrb.mxu1 %v249_v59  ;;  %v302_v34 = vld [vmem:[%s2297_s1 + $0x868] sm:$0xff]  ;;  %v319_v35 = vld [vmem:[%s2297_s1 + $0x8f0] sm:$0xff]  ;;  %v301_v38 = vld [vmem:[%s2297_s1 + $0x860] sm:$0xff] }
  0x79   :  { %760 = vmatpush.msrb.mxu2 %v264_v60  ;;  %779 = vmatpush.msrb.mxu3 %v281_v61  ;;  %v334_v37 = vld [vmem:[%s2297_s1 + $0x968] sm:$0xff]  ;;  %v300_v42 = vld [vmem:[%s2297_s1 + $0x858] sm:$0xff]  ;;  %v317_v43 = vld [vmem:[%s2297_s1 + $0x8e0] sm:$0xff] }
  0x7a   :  { %721 = vmatpush.msrb.mxu0 %v231_v62  ;;  %740 = vmatpush.msrb.mxu1 %v248_v63  ;;  %v318_v39 = vld [vmem:[%s2297_s1 + $0x8e8] sm:$0xff]  ;;  %v332_v44 = vld [vmem:[%s2297_s1 + $0x958] sm:$0xff]  ;;  %v349_v45 = vld [vmem:[%s2297_s1 + $0x9e0] sm:$0xff] }
  0x7b   :  { %761 = vmatpush.msrb.mxu2 %v263_v0  ;;  %780 = vmatpush.msrb.mxu3 %v280_v1  ;;  %v299_v46 = vld [vmem:[%s2297_s1 + $0x850] sm:$0xff]  ;;  %v316_v47 = vld [vmem:[%s2297_s1 + $0x8d8] sm:$0xff]  ;;  %v298_v50 = vld [vmem:[%s2297_s1 + $0x848] sm:$0xff] }
  0x7c   :  { %722 = vmatpush.msrb.mxu0 %v230_v2  ;;  %741 = vmatpush.msrb.mxu1 %v247_v3  ;;  %v331_v48 = vld [vmem:[%s2297_s1 + $0x950] sm:$0xff]  ;;  %v348_v49 = vld [vmem:[%s2297_s1 + $0x9d8] sm:$0xff]  ;;  %v330_v52 = vld [vmem:[%s2297_s1 + $0x948] sm:$0xff] }
  0x7d   :  { %762 = vmatpush.msrb.mxu2 %v262_v4  ;;  %781 = vmatpush.msrb.mxu3 %v279_v5  ;;  %v315_v51 = vld [vmem:[%s2297_s1 + $0x8d0] sm:$0xff]  ;;  %v297_v54 = vld [vmem:[%s2297_s1 + $0x840] sm:$0xff]  ;;  %v314_v55 = vld [vmem:[%s2297_s1 + $0x8c8] sm:$0xff] }
  0x7e   :  { %723 = vmatpush.msrb.mxu0 %v229_v6  ;;  %742 = vmatpush.msrb.mxu1 %v246_v7  ;;  %v347_v53 = vld [vmem:[%s2297_s1 + $0x9d0] sm:$0xff]  ;;  %v329_v56 = vld [vmem:[%s2297_s1 + $0x940] sm:$0xff]  ;;  %v346_v57 = vld [vmem:[%s2297_s1 + $0x9c8] sm:$0xff] }
  0x7f   :  { %763 = vmatpush.msrb.mxu2 %v261_v8  ;;  %782 = vmatpush.msrb.mxu3 %v278_v9  ;;  %v296_v58 = vld [vmem:[%s2297_s1 + $0x838] sm:$0xff]  ;;  %v313_v59 = vld [vmem:[%s2297_s1 + $0x8c0] sm:$0xff]  ;;  %v295_v62 = vld [vmem:[%s2297_s1 + $0x830] sm:$0xff] }
  0x80   :  { %724 = vmatpush.msrb.mxu0 %v228_v10  ;;  %743 = vmatpush.msrb.mxu1 %v245_v11  ;;  %v328_v60 = vld [vmem:[%s2297_s1 + $0x938] sm:$0xff]  ;;  %v345_v61 = vld [vmem:[%s2297_s1 + $0x9c0] sm:$0xff]  ;;  %v327_v0 = vld [vmem:[%s2297_s1 + $0x930] sm:$0xff] }
  0x81   :  { %764 = vmatpush.msrb.mxu2 %v260_v12  ;;  %783 = vmatpush.msrb.mxu3 %v277_v13  ;;  %v312_v63 = vld [vmem:[%s2297_s1 + $0x8b8] sm:$0xff]  ;;  %v294_v2 = vld [vmem:[%s2297_s1 + $0x828] sm:$0xff]  ;;  %v311_v3 = vld [vmem:[%s2297_s1 + $0x8b0] sm:$0xff] }
  0x82   :  { %725 = vmatpush.msrb.mxu0 %v227_v14  ;;  %744 = vmatpush.msrb.mxu1 %v244_v15  ;;  %v344_v1 = vld [vmem:[%s2297_s1 + $0x9b8] sm:$0xff]  ;;  %v326_v4 = vld [vmem:[%s2297_s1 + $0x928] sm:$0xff]  ;;  %v343_v5 = vld [vmem:[%s2297_s1 + $0x9b0] sm:$0xff] }
  0x83   :  { %765 = vmatpush.msrb.mxu2 %v259_v16  ;;  %784 = vmatpush.msrb.mxu3 %v276_v17  ;;  %v293_v6 = vld [vmem:[%s2297_s1 + $0x820] sm:$0xff]  ;;  %v310_v7 = vld [vmem:[%s2297_s1 + $0x8a8] sm:$0xff]  ;;  %v292_v10 = vld [vmem:[%s2297_s1 + $0x818] sm:$0xff] }
  0x84   :  { %726 = vmatpush.msrb.mxu0 %v226_v18  ;;  %745 = vmatpush.msrb.mxu1 %v243_v19  ;;  %v325_v8 = vld [vmem:[%s2297_s1 + $0x920] sm:$0xff]  ;;  %v342_v9 = vld [vmem:[%s2297_s1 + $0x9a8] sm:$0xff]  ;;  %v324_v12 = vld [vmem:[%s2297_s1 + $0x918] sm:$0xff] }
  0x85   :  { %766 = vmatpush.msrb.mxu2 %v258_v20  ;;  %785 = vmatpush.msrb.mxu3 %v275_v21  ;;  %v309_v11 = vld [vmem:[%s2297_s1 + $0x8a0] sm:$0xff]  ;;  %v291_v14 = vld [vmem:[%s2297_s1 + $0x810] sm:$0xff]  ;;  %v308_v15 = vld [vmem:[%s2297_s1 + $0x898] sm:$0xff] }
  0x86   :  { %727 = vmatpush.msrb.mxu0 %v225_v22  ;;  %746 = vmatpush.msrb.mxu1 %v242_v23  ;;  %v341_v13 = vld [vmem:[%s2297_s1 + $0x9a0] sm:$0xff]  ;;  %v323_v16 = vld [vmem:[%s2297_s1 + $0x910] sm:$0xff]  ;;  %v340_v17 = vld [vmem:[%s2297_s1 + $0x998] sm:$0xff] }
  0x87   :  { %767 = vmatpush.msrb.mxu2 %v257_v24  ;;  %786 = vmatpush.msrb.mxu3 %v274_v25  ;;  %v290_v18 = vld [vmem:[%s2297_s1 + $0x808] sm:$0xff]  ;;  %v307_v19 = vld [vmem:[%s2297_s1 + $0x890] sm:$0xff]  ;;  %v289_v22 = vld [vmem:[%s2297_s1 + $0x800] sm:$0xff] }
  0x88   :  { %728 = vmatmul.f32.vlgmr.msrb.gmra.mxu0 %v1756_v33  ;;  %768 = vmatmul.f32.vlgmr.msrb.gmra.mxu2 %v1775_v40  ;;  %v352_v33 = vld [vmem:[%s2297_s1 + $0x9f8] sm:$0xff]  ;;  %v333_v40 = vld [vmem:[%s2297_s1 + $0x960] sm:$0xff]  ;;  %v322_v20 = vld [vmem:[%s2297_s1 + $0x908] sm:$0xff] }
  0x89   :  { %792 = vmatpush.msra.mxu0 %v304_v26  ;;  %832 = vmatpush.msra.mxu2 %v336_v27  ;;  %v339_v21 = vld [vmem:[%s2297_s1 + $0x990] sm:$0xff]  ;;  %v306_v23 = vld [vmem:[%s2297_s1 + $0x888] sm:$0xff]  ;;  %v321_v24 = vld [vmem:[%s2297_s1 + $0x900] sm:$0xff] }
  0x8a   :  { %747 = vmatpush.msrb.mxu1 %v241_v28  ;;  %787 = vmatpush.msrb.mxu3 %v273_v29  ;;  %v338_v25 = vld [vmem:[%s2297_s1 + $0x988] sm:$0xff]  ;;  %v440_v26 = vld.sshfl [vmem:[#allocation1] sm:$0xff pattern:$0x75316420]  ;;  %v368_v28 = vld [vmem:[%s2297_s1 + $0xa78] sm:$0xff] }
  0x8b   :  { %748 = vmatmul.f32.vlgmr.msrb.gmra.mxu1 %v1764_v36  ;;  %788 = vmatmul.f32.vlgmr.msrb.gmra.mxu3 %v1777_v41  ;;  %v351_v36 = vld [vmem:[%s2297_s1 + $0x9f0] sm:$0xff]  ;;  %v350_v41 = vld [vmem:[%s2297_s1 + $0x9e8] sm:$0xff]  ;;  %v305_v29 = vld [vmem:[%s2297_s1 + $0x880] sm:$0xff] }
  0x8c   :  { %793 = vmatpush.msra.mxu0 %v303_v30  ;;  %812 = vmatpush.msra.mxu1 %v320_v31  ;;  %v442_v27 = vld.sshfl [vmem:[#allocation1 + $0x10] sm:$0xff pattern:$0x75316420]  ;;  %v337_v30 = vld [vmem:[%s2297_s1 + $0x980] sm:$0xff] }
  0x8d   :  { %833 = vmatpush.msra.mxu2 %v335_v32  ;;  %852 = vmatpush.msra.mxu3 %v352_v33  ;;  %v441_v31 = vld.sshfl [vmem:[#allocation1 + $0x8] sm:$0xff pattern:$0x75316420]  ;;  %v443_v32 = vld.sshfl [vmem:[#allocation1 + $0x18] sm:$0xff pattern:$0x75316420] }
  0x8e   :  { %794 = vmatpush.msra.mxu0 %v302_v34  ;;  %813 = vmatpush.msra.mxu1 %v319_v35  ;;  %v367_v33 = vld [vmem:[%s2297_s1 + $0xa70] sm:$0xff]  ;;  %v384_v34 = vld [vmem:[%s2297_s1 + $0xaf8] sm:$0xff] }
  0x8f   :  { %834 = vmatpush.msra.mxu2 %v334_v37  ;;  %853 = vmatpush.msra.mxu3 %v351_v36  ;;  %v392_v35 = vld [vmem:[%s2297_s1 + $0xb38] sm:$0xff]  ;;  %v366_v37 = vld [vmem:[%s2297_s1 + $0xa68] sm:$0xff]  ;;  %v383_v36 = vld [vmem:[%s2297_s1 + $0xaf0] sm:$0xff] }
  0x90   :  { %795 = vmatpush.msra.mxu0 %v301_v38  ;;  %814 = vmatpush.msra.mxu1 %v318_v39  ;;  %v391_v38 = vld [vmem:[%s2297_s1 + $0xb30] sm:$0xff]  ;;  %v365_v39 = vld [vmem:[%s2297_s1 + $0xa60] sm:$0xff] }
  0x91   :  { %835 = vmatpush.msra.mxu2 %v333_v40  ;;  %854 = vmatpush.msra.mxu3 %v350_v41  ;;  %v382_v40 = vld [vmem:[%s2297_s1 + $0xae8] sm:$0xff] }
  0x92   :  { %796 = vmatpush.msra.mxu0 %v300_v42  ;;  %815 = vmatpush.msra.mxu1 %v317_v43  ;;  %v390_v41 = vld [vmem:[%s2297_s1 + $0xb28] sm:$0xff]  ;;  %v364_v42 = vld [vmem:[%s2297_s1 + $0xa58] sm:$0xff]  ;;  %v381_v43 = vld [vmem:[%s2297_s1 + $0xae0] sm:$0xff] }
  0x93   :  { %836 = vmatpush.msra.mxu2 %v332_v44  ;;  %855 = vmatpush.msra.mxu3 %v349_v45  ;;  %v389_v44 = vld [vmem:[%s2297_s1 + $0xb20] sm:$0xff]  ;;  %v363_v45 = vld [vmem:[%s2297_s1 + $0xa50] sm:$0xff] }
  0x94   :  { %797 = vmatpush.msra.mxu0 %v299_v46  ;;  %816 = vmatpush.msra.mxu1 %v316_v47  ;;  %v380_v46 = vld [vmem:[%s2297_s1 + $0xad8] sm:$0xff] }
  0x95   :  { %837 = vmatpush.msra.mxu2 %v331_v48  ;;  %856 = vmatpush.msra.mxu3 %v348_v49  ;;  %v388_v47 = vld [vmem:[%s2297_s1 + $0xb18] sm:$0xff]  ;;  %v362_v48 = vld [vmem:[%s2297_s1 + $0xa48] sm:$0xff]  ;;  %v379_v49 = vld [vmem:[%s2297_s1 + $0xad0] sm:$0xff] }
  0x96   :  { %798 = vmatpush.msra.mxu0 %v298_v50  ;;  %817 = vmatpush.msra.mxu1 %v315_v51  ;;  %v387_v50 = vld [vmem:[%s2297_s1 + $0xb10] sm:$0xff]  ;;  %v361_v51 = vld [vmem:[%s2297_s1 + $0xa40] sm:$0xff] }
  0x97   :  { %838 = vmatpush.msra.mxu2 %v330_v52  ;;  %857 = vmatpush.msra.mxu3 %v347_v53  ;;  %v378_v52 = vld [vmem:[%s2297_s1 + $0xac8] sm:$0xff] }
  0x98   :  { %799 = vmatpush.msra.mxu0 %v297_v54  ;;  %818 = vmatpush.msra.mxu1 %v314_v55  ;;  %v386_v53 = vld [vmem:[%s2297_s1 + $0xb08] sm:$0xff]  ;;  %v360_v54 = vld [vmem:[%s2297_s1 + $0xa38] sm:$0xff]  ;;  %v377_v55 = vld [vmem:[%s2297_s1 + $0xac0] sm:$0xff] }
  0x99   :  { %839 = vmatpush.msra.mxu2 %v329_v56  ;;  %858 = vmatpush.msra.mxu3 %v346_v57  ;;  %v385_v56 = vld [vmem:[%s2297_s1 + $0xb00] sm:$0xff]  ;;  %v359_v57 = vld [vmem:[%s2297_s1 + $0xa30] sm:$0xff] }
  0x9a   :  { %800 = vmatpush.msra.mxu0 %v296_v58  ;;  %819 = vmatpush.msra.mxu1 %v313_v59  ;;  %v446_v58 = vld.sshfl [vmem:[#allocation1 + $0x30] sm:$0xff pattern:$0x75316420]  ;;  %v376_v59 = vld [vmem:[%s2297_s1 + $0xab8] sm:$0xff] }
  0x9b   :  { %840 = vmatpush.msra.mxu2 %v328_v60  ;;  %859 = vmatpush.msra.mxu3 %v345_v61  ;;  %v358_v60 = vld [vmem:[%s2297_s1 + $0xa28] sm:$0xff]  ;;  %v375_v61 = vld [vmem:[%s2297_s1 + $0xab0] sm:$0xff] }
  0x9c   :  { %801 = vmatpush.msra.mxu0 %v295_v62  ;;  %820 = vmatpush.msra.mxu1 %v312_v63  ;;  %v357_v62 = vld [vmem:[%s2297_s1 + $0xa20] sm:$0xff]  ;;  %v374_v63 = vld [vmem:[%s2297_s1 + $0xaa8] sm:$0xff] }
  0x9d   :  { %841 = vmatpush.msra.mxu2 %v327_v0  ;;  %860 = vmatpush.msra.mxu3 %v344_v1  ;;  %v356_v0 = vld [vmem:[%s2297_s1 + $0xa18] sm:$0xff]  ;;  %v373_v1 = vld [vmem:[%s2297_s1 + $0xaa0] sm:$0xff] }
  0x9e   :  { %802 = vmatpush.msra.mxu0 %v294_v2  ;;  %821 = vmatpush.msra.mxu1 %v311_v3  ;;  %v355_v2 = vld [vmem:[%s2297_s1 + $0xa10] sm:$0xff]  ;;  %v372_v3 = vld [vmem:[%s2297_s1 + $0xa98] sm:$0xff] }
  0x9f   :  { %842 = vmatpush.msra.mxu2 %v326_v4  ;;  %861 = vmatpush.msra.mxu3 %v343_v5  ;;  %v354_v4 = vld [vmem:[%s2297_s1 + $0xa08] sm:$0xff]  ;;  %v371_v5 = vld [vmem:[%s2297_s1 + $0xa90] sm:$0xff] }
  0xa0   :  { %803 = vmatpush.msra.mxu0 %v293_v6  ;;  %822 = vmatpush.msra.mxu1 %v310_v7  ;;  %v353_v6 = vld [vmem:[%s2297_s1 + $0xa00] sm:$0xff]  ;;  %v370_v7 = vld [vmem:[%s2297_s1 + $0xa88] sm:$0xff] }
  0xa1   :  { %843 = vmatpush.msra.mxu2 %v325_v8  ;;  %862 = vmatpush.msra.mxu3 %v342_v9  ;;  %v444_v8 = vld.sshfl [vmem:[#allocation1 + $0x20] sm:$0xff pattern:$0x75316420] }
  0xa2   :  { %804 = vmatpush.msra.mxu0 %v292_v10  ;;  %823 = vmatpush.msra.mxu1 %v309_v11  ;;  %v369_v9 = vld [vmem:[%s2297_s1 + $0xa80] sm:$0xff]  ;;  %v445_v10 = vld.sshfl [vmem:[#allocation1 + $0x28] sm:$0xff pattern:$0x75316420]  ;;  %s1011_s1 = sshll.u32 %s2301_s5, 4  ;;  %s1012_s1 = int_to_ptr.hbm [resolvable:$true] %s1011_s1 }
  0xa3   :  { %844 = vmatpush.msra.mxu2 %v324_v12  ;;  %863 = vmatpush.msra.mxu3 %v341_v13  ;;  %v1024_v11 = vld [vmem:[%s2298_s2] ss:$0 sm:$0xff] }
  0xa4   :  { %805 = vmatpush.msra.mxu0 %v291_v14  ;;  %824 = vmatpush.msra.mxu1 %v308_v15 }
  0xa5   :  { %845 = vmatpush.msra.mxu2 %v323_v16  ;;  %864 = vmatpush.msra.mxu3 %v340_v17 }
  0xa6   :  { %806 = vmatpush.msra.mxu0 %v290_v18  ;;  %825 = vmatpush.msra.mxu1 %v307_v19  ;;  %v945_v19 = vld [vmem:[%s2299_s3 + $0x60] sm:$0xf] }
  0xa7   :  { %846 = vmatpush.msra.mxu2 %v322_v20  ;;  %865 = vmatpush.msra.mxu3 %v339_v21  ;;  %v944_v20 = vld [vmem:[%s2299_s3 + $0x58] sm:$0xff] }
  0xa8   :  { %807 = vmatpush.msra.mxu0 %v289_v22  ;;  %826 = vmatpush.msra.mxu1 %v306_v23  ;;  %v943_v23 = vld [vmem:[%s2299_s3 + $0x50] sm:$0xff] }
  0xa9   :  { %847 = vmatpush.msra.mxu2 %v321_v24  ;;  %866 = vmatpush.msra.mxu3 %v338_v25  ;;  %v942_v24 = vld [vmem:[%s2299_s3 + $0x48] sm:$0xff] }
  0xaa   :  { %808 = vmatmul.f32.vlgmr.msra.gmra.mxu0 %v440_v26  ;;  %848 = vmatmul.f32.vlgmr.msra.gmra.mxu2 %v442_v27  ;;  %v941_v27 = vld [vmem:[%s2299_s3 + $0x40] sm:$0xff] }
  0xab   :  { %872 = vmatpush.msrb.mxu0 %v368_v28  ;;  %827 = vmatpush.msra.mxu1 %v305_v29  ;;  %v940_v28 = vld [vmem:[%s2299_s3 + $0x38] sm:$0xff] }
  0xac   :  { %867 = vmatpush.msra.mxu3 %v337_v30  ;;  %828 = vmatmul.f32.vlgmr.msra.gmra.mxu1 %v441_v31  ;;  %v939_v31 = vld [vmem:[%s2299_s3 + $0x30] sm:$0xff] }
  0xad   :  { %868 = vmatmul.f32.vlgmr.msra.gmra.mxu3 %v443_v32  ;;  %873 = vmatpush.msrb.mxu0 %v367_v33  ;;  %v938_v32 = vld [vmem:[%s2299_s3 + $0x28] sm:$0xff] }
  0xae   :  { %892 = vmatpush.msrb.mxu1 %v384_v34  ;;  %920 = vmatpush.msrb.mxu2 %v392_v35 }
  0xaf   :  { %874 = vmatpush.msrb.mxu0 %v366_v37  ;;  %1021 = vmatpush.msk.msrb.mxu3 %vm954_vm1, %v945_v19 }
  0xb0   :  { %893 = vmatpush.msrb.mxu1 %v383_v36  ;;  %921 = vmatpush.msrb.mxu2 %v391_v38 }
  0xb1   :  { %875 = vmatpush.msrb.mxu0 %v365_v39  ;;  %962 = vmatpush.msrb.mxu3 %v944_v20 }
  0xb2   :  { %894 = vmatpush.msrb.mxu1 %v382_v40  ;;  %922 = vmatpush.msrb.mxu2 %v390_v41  ;;  %v937_v40 = vld [vmem:[%s2299_s3 + $0x20] sm:$0xff] }
  0xb3   :  { %876 = vmatpush.msrb.mxu0 %v364_v42  ;;  %963 = vmatpush.msrb.mxu3 %v943_v23  ;;  %v936_v42 = vld [vmem:[%s2299_s3 + $0x18] sm:$0xff] }
  0xb4   :  { %895 = vmatpush.msrb.mxu1 %v381_v43  ;;  %923 = vmatpush.msrb.mxu2 %v389_v44 }
  0xb5   :  { %877 = vmatpush.msrb.mxu0 %v363_v45  ;;  %964 = vmatpush.msrb.mxu3 %v942_v24  ;;  %v935_v45 = vld [vmem:[%s2299_s3 + $0x10] sm:$0xff] }
  0xb6   :  { %896 = vmatpush.msrb.mxu1 %v380_v46  ;;  %924 = vmatpush.msrb.mxu2 %v388_v47  ;;  %v934_v47 = vld [vmem:[%s2299_s3 + $0x8] sm:$0xff] }
  0xb7   :  { %878 = vmatpush.msrb.mxu0 %v362_v48  ;;  %965 = vmatpush.msrb.mxu3 %v941_v27 }
  0xb8   :  { %897 = vmatpush.msrb.mxu1 %v379_v49  ;;  %925 = vmatpush.msrb.mxu2 %v387_v50  ;;  %v933_v49 = vld [vmem:[%s2299_s3] sm:$0xff] }
  0xb9   :  { %879 = vmatpush.msrb.mxu0 %v361_v51  ;;  %966 = vmatpush.msrb.mxu3 %v940_v28 }
  0xba   :  { %898 = vmatpush.msrb.mxu1 %v378_v52  ;;  %926 = vmatpush.msrb.mxu2 %v386_v53 }
  0xbb   :  { %880 = vmatpush.msrb.mxu0 %v360_v54  ;;  %967 = vmatpush.msrb.mxu3 %v939_v31 }
  0xbc   :  { %899 = vmatpush.msrb.mxu1 %v377_v55  ;;  %927 = vmatpush.msrb.mxu2 %v385_v56 }
  0xbd   :  { %881 = vmatpush.msrb.mxu0 %v359_v57  ;;  %1020 = vmatmul.msk.f32.vlgmr.msrb.gmra.mxu2 %vm469_vm0, %v446_v58 }
  0xbe   :  { %900 = vmatpush.msrb.mxu1 %v376_v59  ;;  %968 = vmatpush.msrb.mxu3 %v938_v32 }
  0xbf   :  { %882 = vmatpush.msrb.mxu0 %v358_v60  ;;  %v489_v12 = vpop.f32.mrf.mxu0 }
  0xc0   :  { %901 = vmatpush.msrb.mxu1 %v375_v61  ;;  %v490_v13 = vadd.f32 %v1024_v11, %v489_v12  ;;  %969 = vmatpush.msrb.mxu3 %v937_v40 }
  0xc1   :  { %883 = vmatpush.msrb.mxu0 %v357_v62 }
  0xc2   :  { %902 = vmatpush.msrb.mxu1 %v374_v63  ;;  %v509_v14 = vpop.f32.mrf.mxu1  ;;  %970 = vmatpush.msrb.mxu3 %v936_v42 }
  0xc3   :  { %884 = vmatpush.msrb.mxu0 %v356_v0  ;;  %v510_v15 = vadd.f32 %v509_v14, %v490_v13  ;;  %v529_v16 = vpop.f32.mrf.mxu2 }
  0xc4   :  { %903 = vmatpush.msrb.mxu1 %v373_v1  ;;  %971 = vmatpush.msrb.mxu3 %v935_v45 }
  0xc5   :  { %885 = vmatpush.msrb.mxu0 %v355_v2  ;;  %v530_v17 = vadd.f32 %v529_v16, %v510_v15 }
  0xc6   :  { %904 = vmatpush.msrb.mxu1 %v372_v3  ;;  %v549_v18 = vpop.f32.mrf.mxu3  ;;  %972 = vmatpush.msrb.mxu3 %v934_v47 }
  0xc7   :  { %886 = vmatpush.msrb.mxu0 %v354_v4  ;;  %v550_v21 = vadd.f32 %v549_v18, %v530_v17 }
  0xc8   :  { %905 = vmatpush.msrb.mxu1 %v371_v5  ;;  %973 = vmatpush.msrb.mxu3 %v933_v49 }
  0xc9   :  { %887 = vmatpush.msrb.mxu0 %v353_v6  ;;  %v569_v22 = vpop.f32.mrf.mxu0 }
  0xca   :  { %906 = vmatpush.msrb.mxu1 %v370_v7  ;;  %888 = vmatmul.f32.vlgmr.msrb.gmra.mxu0 %v444_v8  ;;  %v570_v25 = vadd.f32 %v569_v22, %v550_v21  ;;  %v1025_v8 = vld [vmem:[%s2300_s4] ss:$0 sm:$0xff]  ;;  %s1056_s4 = smov [#allocation2]  }
  0xcb   :  { %s1009_s26 = sshll.u32 %s1056_s4, 4  ;;  %s1010_s26 = int_to_ptr.vmem [resolvable:$true] %s1009_s26 }
  0xcc   :  { %907 = vmatpush.msrb.mxu1 %v369_v9  ;;  %v589_v26 = vpop.f32.mrf.mxu1 }
  0xcd   :  { %908 = vmatmul.f32.vlgmr.msrb.gmra.mxu1 %v445_v10  ;;  %v590_v29 = vadd.f32 %v589_v26, %v570_v25  ;;  %v609_v30 = vpop.f32.mrf.mxu2 }
  0xcf   :  { %v610_v33 = vadd.f32 %v609_v30, %v590_v29 }
  0xd0   :  { %v629_v34 = vpop.f32.mrf.mxu3 }
  0xd1   :  { %v630_v37 = vadd.f32 %v629_v34, %v610_v33 }
  0xe3   :  { %v649_v35 = vpop.f32.mrf.mxu0 }
  0xe4   :  { %v650_v36 = vadd.f32 %v649_v35, %v630_v37 }
  0xe6   :  { %v669_v38 = vpop.f32.mrf.mxu1 }
  0xe7   :  { %v670_v41 = vadd.f32 %v669_v38, %v650_v36 }
  0xe9   :  { %v689_v39 = vpop.f32.mrf.mxu2 }
  0xea   :  { %v690_v43 = vadd.f32 %v689_v39, %v670_v41 }
  0xec   :  { %v709_v44 = vpop.f32.mrf.mxu3 }
  0xed   :  { %v710_v48 = vadd.f32 %v709_v44, %v690_v43 }
 0x105   :  { %v729_v46 = vpop.f32.mrf.mxu0 }
 0x106   :  { %v730_v50 = vadd.f32 %v729_v46, %v710_v48 }
 0x108   :  { %v749_v51 = vpop.f32.mrf.mxu1 }
 0x109   :  { %v750_v53 = vadd.f32 %v749_v51, %v730_v50 }
 0x10b   :  { %v769_v52 = vpop.f32.mrf.mxu2 }
 0x10c   :  { %v770_v54 = vadd.f32 %v769_v52, %v750_v53 }
 0x10e   :  { %v789_v55 = vpop.f32.mrf.mxu3 }
 0x10f   :  { %v790_v57 = vadd.f32 %v789_v55, %v770_v54 }
 0x127   :  { %v809_v56 = vpop.f32.mrf.mxu0 }
 0x128   :  { %v810_v58 = vadd.f32 %v809_v56, %v790_v57 }
 0x129   :  { %v829_v59 = vpop.f32.mrf.mxu1 }
 0x12a   :  { %v830_v61 = vadd.f32 %v829_v59, %v810_v58 }
 0x12d   :  { %v849_v60 = vpop.f32.mrf.mxu2 }
 0x12e   :  { %v850_v62 = vadd.f32 %v849_v60, %v830_v61 }
 0x130   :  { %v869_v63 = vpop.f32.mrf.mxu3 }
 0x131   :  { %v870_v0 = vadd.f32 %v869_v63, %v850_v62 }
 0x140   :  { %v929_v4 = vpop.f32.mrf.mxu2 }
 0x147   :  { %v889_v1 = vpop.f32.mrf.mxu0 }
 0x148   :  { %v890_v2 = vadd.f32 %v889_v1, %v870_v0 }
 0x14a   :  { %v909_v3 = vpop.f32.mrf.mxu1 }
 0x14b   :  { %v910_v5 = vadd.f32 %v909_v3, %v890_v2 }
 0x14d   :  { %v930_v6 = vadd.f32 %v929_v4, %v910_v5 }
 0x14f   :  { %v932_v7 = vmax.f32 %v930_v6, 0.0 }
 0x151   :  { %1022 = vmatmul.msk.f32.vlgmr.msrb.gmra.mxu3 %vm950_vm2, %v932_v7 }
 0x1d4   :  { %v975_v9 = vpop.f32.mrf.mxu3 }
 0x1d5   :  { %v976_v10 = vadd.f32 %v1025_v8, %v975_v9 }
 0x1d7   :  { %v979_v11 = vsel %vm978_vm3, %v976_v10, -inf }
 0x1d8   :  { %980 = vmax.xlane.f32.xlu0 %v979_v11 }
 0x24b   :  { %v981_v12 = vpop.xlane.xlu0 %980 }
 0x24c   :  { %v982_v13 = vsub.f32 %v976_v10, %v981_v12 }
 0x24e   :  { %v983_v14 = vmul.f32 1.442695, %v982_v13 }
 0x250   :  { %1026 = vpow2.f32 %v983_v14 }
 0x256   :  { %v1027_v15 = vpop.eup %1026 }
 0x257   :  { %v985_v16 = vsel %vm978_vm3, %v1027_v15, 0.0 }
 0x258   :  { %986 = vadd.xlane.f32.xlu0 %v985_v16 }
 0x2cb   :  { %v987_v17 = vpop.xlane.xlu0 %986 }
 0x2cc   :  { %1028 = vrcp.f32 %v987_v17  ;;  %v999_v21 = vand.u32 2147483648, %v987_v17  ;;  %v997_v23 = vand.u32 2147483647, %v987_v17  ;;  %vm993_vm5 = vweird.f32 %v987_v17 }
 0x2ce   :  { %v1000_v25 = vor.u32 1.1754944e-38, %v999_v21  ;;  %vm998_vm7 = vcmp.eq.f32.partialorder %v997_v23, 8.507059e+37 }
 0x2d2   :  { %v1029_v18 = vpop.eup %1028 }
 0x2d3   :  { %v989_v19 = vmul.f32 %v1029_v18, %v987_v17  ;;  %vm994_vm4 = vweird.f32 %v1029_v18 }
 0x2d4   :  { %vm995_vm6 = vmor %vm993_vm5, %vm994_vm4 }
 0x2d5   :  { %v990_v20 = vsub.f32 1.0, %v989_v19 }
 0x2d7   :  { %v991_v22 = vmul.f32 %v1029_v18, %v990_v20 }
 0x2d9   :  { %v992_v24 = vadd.f32 %v1029_v18, %v991_v22 }
 0x2db   :  { %v996_v26 = vsel %vm995_vm6, %v1029_v18, %v992_v24 }
 0x2dc   :  { %v1001_v27 = vsel %vm998_vm7, %v1000_v25, %v996_v26 }
 0x2dd   :  { %v1002_v28 = vmul.f32 %v1027_v15, %v1001_v27 }
 0x2df   :  { %1003 = vst.msk [vmem:[#allocation2] sm:$0xf] %vm978_vm3, %v1002_v28 }
 0x2e0   :  { %1014 = dma.vmem_to_hbm [thread:$0]  %s1010_s26, 64, %s1012_s1, [#allocation3]  }
 0x2e1   :  { %1054 = dma.done.wait [#allocation3], 64  }
 0x2e2   :  { %1055 = vsyncadd [#allocation3], 4294967232 }
 0x2e3   :  { %1019 = vsyncpa [#allocation3], 1 }

</bundles_post_ra>
